<compile_context>
chip_gen: v6e
topology: v6e:2x2x1
jax: 0.10.0
libtpu: 0.0.40
codegen_flags: <defaults>
</compile_context>

<pallas_src>
import functools

import jax
import jax.numpy as jnp
from jax import lax
from jax.experimental import pallas as pl
from jax.experimental.pallas import tpu as pltpu

LANES = 128
MIN_SPLIT_ROWS = 2048  # >= this many rows: use >=2 blocks so v7x megacore helps


@functools.lru_cache(maxsize=1)
def _row_tile_cap():
    """Generation-aware cap on rows (of 128 lanes) per grid step."""
    try:
        kind = jax.devices()[0].device_kind.lower()
    except Exception:
        kind = ""
    # v5e: 16 MiB default scoped VMEM -> 4096 rows = 8 MiB double-buffered.
    if "v5 lite" in kind or "v5e" in kind or "v5litepod" in kind:
        return 4096
    # v6e / v7x: 32 MiB scoped VMEM -> 8192 rows = 16 MiB double-buffered.
    if "v6" in kind or "v7" in kind or "7x" in kind:
        return 8192
    return 4096  # unknown chip: conservative


def _elementwise_loss(d, threshold):
    """Static-Python dispatch on the threshold value (d is f32)."""
    sq = d * d
    if threshold is None:
        return sq
    thr = float(threshold)
    thr_sq = jnp.float32(thr * thr)
    if thr > 0.0:
        # |d| < thr  <=>  d*d < thr*thr  (thr > 0): one VPU min instead of
        # abs + cmp + select.
        return jnp.minimum(sq, thr_sq)
    # thr <= 0: predicate never true; keep the faithful select.
    return jnp.where(jnp.abs(d) < jnp.float32(thr), sq, thr_sq)


def _make_kernel(threshold, row_tile, rem_rows, nblocks):
    needs_mask = rem_rows != row_tile  # static: only the last block is partial

    def kernel(pred_ref, targ_ref, out_ref):
        # Native-dtype loads; widen to f32 on the VPU (hidden under the DMA).
        d = pred_ref[...].astype(jnp.float32) - targ_ref[...].astype(jnp.float32)
        loss = _elementwise_loss(d, threshold)

        def write_partial(x):
            # (row_tile, 128) -> per-lane partial sums -> one lane-dense block.
            out_ref[...] = x.sum(axis=0, keepdims=True).reshape(1, 1, LANES)

        if needs_mask:
            i = pl.program_id(0)

            @pl.when(i != nblocks - 1)
            def _():
                write_partial(loss)

            @pl.when(i == nblocks - 1)
            def _():
                # Last block reads `row_tile - rem_rows` OOB rows of
                # unspecified VMEM; mask via a *local* row index (select, so
                # NaN/Inf garbage is replaced, never multiplied).  Static
                # remainder -> no int32 flat-index overflow for n >= 2**31.
                row = lax.broadcasted_iota(jnp.int32, loss.shape, 0)
                write_partial(jnp.where(row < rem_rows, loss, 0.0))
        else:
            write_partial(loss)

    return kernel


@functools.partial(jax.jit, static_argnames=("threshold", "row_cap"))
def _custom_loss_impl(pred, targ, threshold, row_cap):
    assert pred.shape == targ.shape, (pred.shape, targ.shape)
    n = pred.size
    rows = n // LANES          # full 128-lane rows handled by the kernel
    n_main = rows * LANES
    tail = n - n_main          # < 128 leftover elements handled in-wrapper

    pred_flat = pred.reshape(-1)
    targ_flat = targ.reshape(-1)

    total = jnp.float32(0.0)

    if rows > 0:
        # Bulk: lane-dense [rows, 128] view.  Zero-copy bitcast when tail == 0;
        # otherwise a prefix view (never a padded copy of the full arrays).
        if tail:
            pred2d = pred_flat[:n_main].reshape(rows, LANES)
            targ2d = targ_flat[:n_main].reshape(rows, LANES)
        else:
            pred2d = pred_flat.reshape(rows, LANES)
            targ2d = targ_flat.reshape(rows, LANES)

        # --- row-tile selection -------------------------------------------
        if rows <= row_cap:
            if rows >= MIN_SPLIT_ROWS:
                # Two balanced blocks so both v7x TensorCores stream.
                row_tile = -(-(-(-rows // 2)) // 8) * 8
            else:
                row_tile = rows            # single block == full dim (legal)
        else:
            nblocks0 = -(-rows // row_cap)
            # Balance block sizes; keep sublane block dim a multiple of 8.
            row_tile = -(-(-(-rows // nblocks0)) // 8) * 8
        nblocks = -(-rows // row_tile)
        rem_rows = rows - (nblocks - 1) * row_tile  # rows valid in last block

        in_bytes = pred.dtype.itemsize + targ.dtype.itemsize
        cost = pl.CostEstimate(
            flops=5 * n_main,                       # sub, sq, min/select, row-sum
            transcendentals=0,
            bytes_accessed=n_main * in_bytes + nblocks * LANES * 4,
        )

        partials = pl.pallas_call(
            _make_kernel(threshold, row_tile, rem_rows, nblocks),
            out_shape=jax.ShapeDtypeStruct((nblocks, 1, LANES), jnp.float32),
            grid_spec=pltpu.PrefetchScalarGridSpec(
                num_scalar_prefetch=0,
                grid=(nblocks,),
                in_specs=[
                    pl.BlockSpec((row_tile, LANES), lambda i: (i, 0)),  # pred
                    pl.BlockSpec((row_tile, LANES), lambda i: (i, 0)),  # targ
                ],
                out_specs=pl.BlockSpec((1, 1, LANES), lambda i: (i, 0, 0)),
            ),
            compiler_params=pltpu.CompilerParams(
                # No cross-step state -> shard the grid across v7x's two TCs.
                dimension_semantics=("parallel",),
                vmem_limit_bytes=32 * 1024 * 1024,
            ),
            cost_estimate=cost,
        )(pred2d, targ2d)

        total = total + jnp.sum(partials)

    if tail:
        # <128 elements: trivial jnp epilogue folded into the final reduce.
        pt = pred_flat[n_main:].astype(jnp.float32)
        tt = targ_flat[n_main:].astype(jnp.float32)
        total = total + jnp.sum(_elementwise_loss(pt - tt, threshold))

    return total / jnp.float32(n)


class CustomLossPallas:
    """JAX/Pallas port of Util/fit.py::CustomLoss (forward pass)."""

    def __init__(self, threshold=None):
        self._threshold = None if threshold is None else float(threshold)

    def __call__(self, pred, targ):
        return _custom_loss_impl(pred, targ, self._threshold, _row_tile_cap())


def _reference(pred, targ, threshold=None):
    pred = pred.astype(jnp.float32)
    targ = targ.astype(jnp.float32)
    d = pred - targ
    if threshold is not None:
        thr = jnp.float32(threshold)
        loss = jnp.where(jnp.abs(d) < thr, d * d, thr * thr)
    else:
        loss = d * d
    return jnp.mean(loss)


if __name__ == "__main__":
    key = jax.random.PRNGKey(0)
    k1, k2, k3, k4, k5, k6 = jax.random.split(key, 6)

    # NCHW-like prediction/target pair (n % 128 == 0 -> zero-copy bitcast path).
    pred = jax.random.normal(k1, (2, 4, 16, 16), dtype=jnp.float32)
    targ = jax.random.normal(k2, (2, 4, 16, 16), dtype=jnp.float32)

    out_thr = CustomLossPallas(threshold=0.5)(pred, targ)
    jax.block_until_ready(out_thr)
    ref_thr = _reference(pred, targ, threshold=0.5)
    assert jnp.allclose(out_thr, ref_thr, rtol=1e-5, atol=1e-6), (out_thr, ref_thr)

    out_mse = CustomLossPallas(threshold=None)(pred, targ)
    jax.block_until_ready(out_mse)
    ref_mse = _reference(pred, targ, threshold=None)
    assert jnp.allclose(out_mse, ref_mse, rtol=1e-5, atol=1e-6), (out_mse, ref_mse)

    # Ragged element count (1155): exercises the no-pad prefix + jnp-tail path.
    pred_r = jax.random.normal(k3, (3, 5, 7, 11), dtype=jnp.float32)
    targ_r = jax.random.normal(k4, (3, 5, 7, 11), dtype=jnp.float32)

    out_rag = CustomLossPallas(threshold=0.25)(pred_r, targ_r)
    jax.block_until_ready(out_rag)
    ref_rag = _reference(pred_r, targ_r, threshold=0.25)
    assert jnp.allclose(out_rag, ref_rag, rtol=1e-5, atol=1e-6), (out_rag, ref_rag)

    # Non-positive threshold: exact because padding is never folded into the sum.
    out_neg = CustomLossPallas(threshold=-0.3)(pred_r, targ_r)
    jax.block_until_ready(out_neg)
    ref_neg = _reference(pred_r, targ_r, threshold=-0.3)
    assert jnp.allclose(out_neg, ref_neg, rtol=1e-5, atol=1e-6), (out_neg, ref_neg)

    # Two balanced blocks + masked partial last block (rows=2056 >= MIN_SPLIT_ROWS).
    pred_b = jax.random.normal(k5, (2, 4, 257, 128), dtype=jnp.float32)
    targ_b = jax.random.normal(k6, (2, 4, 257, 128), dtype=jnp.float32)

    out_big = CustomLossPallas(threshold=0.5)(pred_b, targ_b)
    jax.block_until_ready(out_big)
    ref_big = _reference(pred_b, targ_b, threshold=0.5)
    assert jnp.allclose(out_big, ref_big, rtol=1e-4, atol=1e-6), (out_big, ref_big)

    print("KERNEL_OK")
</pallas_src>

<mosaic_0001>
module attributes {stable_mosaic.version = 11 : i64} {
  func.func @kernel(%arg0: i32, %arg1: memref<16x128xf32, #tpu.memory_space<vmem>>, %arg2: memref<16x128xf32, #tpu.memory_space<vmem>>, %arg3: memref<1x1x128xf32, #tpu.memory_space<vmem>>) attributes {dimension_semantics = [#tpu.dimension_semantics<parallel>], iteration_bounds = array<i64: 1>, scalar_prefetch = 0 : i64, scratch_operands = 0 : i64, tpu.core_type = #tpu.core_type<tc>, window_params = [{transform_indices = @transform_0, window_bounds = array<i64: 16, 128>}, {transform_indices = @transform_1, window_bounds = array<i64: 16, 128>}, {transform_indices = @transform_2, window_bounds = array<i64: 1, 1, 128>}]} {
    %c0 = arith.constant 0 : index
    %c0_0 = arith.constant 0 : index
    %0 = vector.load %arg1[%c0, %c0_0] : memref<16x128xf32, #tpu.memory_space<vmem>>, vector<16x128xf32>
    %c0_1 = arith.constant 0 : index
    %c0_2 = arith.constant 0 : index
    %1 = vector.load %arg2[%c0_1, %c0_2] : memref<16x128xf32, #tpu.memory_space<vmem>>, vector<16x128xf32>
    %2 = arith.subf %0, %1 : vector<16x128xf32>
    %3 = arith.mulf %2, %2 : vector<16x128xf32>
    %cst = arith.constant 2.500000e-01 : f32
    %4 = vector.broadcast %cst : f32 to vector<16x128xf32>
    %5 = arith.minimumf %3, %4 : vector<16x128xf32>
    %cst_3 = arith.constant dense<0.000000e+00> : vector<128xf32>
    %6 = vector.multi_reduction <add>, %5, %cst_3 [0] : vector<16x128xf32> to vector<128xf32>
    %7 = vector.shape_cast %6 : vector<128xf32> to vector<1x128xf32>
    %8 = vector.shape_cast %7 : vector<1x128xf32> to vector<1x1x128xf32>
    %c0_4 = arith.constant 0 : index
    %c0_5 = arith.constant 0 : index
    %c0_6 = arith.constant 0 : index
    %9 = vector.load %arg3[%c0_4, %c0_5, %c0_6] : memref<1x1x128xf32, #tpu.memory_space<vmem>>, vector<1x1x128xf32>
    tpu.vector_store %arg3[%c0_4, %c0_5, %c0_6], %8 {strides = array<i32>} : memref<1x1x128xf32, #tpu.memory_space<vmem>>, vector<1x1x128xf32>,
    return
  }
  func.func @transform_0(%arg0: i32) -> (i32, i32) {
    %c0_i32 = arith.constant 0 : i32
    %c0_i32_0 = arith.constant 0 : i32
    return %arg0, %c0_i32 : i32, i32
  }
  func.func @transform_1(%arg0: i32) -> (i32, i32) {
    %c0_i32 = arith.constant 0 : i32
    %c0_i32_0 = arith.constant 0 : i32
    return %arg0, %c0_i32 : i32, i32
  }
  func.func @transform_2(%arg0: i32) -> (i32, i32, i32) {
    %c0_i32 = arith.constant 0 : i32
    %c0_i32_0 = arith.constant 0 : i32
    %c0_i32_1 = arith.constant 0 : i32
    return %arg0, %c0_i32, %c0_i32_0 : i32, i32, i32
  }
}

</mosaic_0001>

<bundles_post_ra>
// kernel: _custom_loss_impl.1
= control target key start
LH: loop header
LB: loop body
LE: loop exit
PB: predicated region body
PF: predicated region fallthrough
CT: control target
= control target key end

     0   :  { %s63_s0 = inlined_call_operand.vmem [shape: f32[16,128], index: 0, kind: input, shape index: {}]   ;;  %s64_s1 = inlined_call_operand.vmem [shape: f32[16,128], index: 1, kind: input, shape index: {}]   ;;  %s65_s2 = inlined_call_operand.vmem [shape: f32[1,1,128], index: 2, kind: output, shape index: {}]  }
   0x1   :  { %v11_v0 = vld [vmem:[%s63_s0] sm:$0xff]  ;;  %v12_v1 = vld [vmem:[%s63_s0 + $0x8] sm:$0xff] }
   0x2   :  { %v13_v2 = vld [vmem:[%s64_s1] sm:$0xff]  ;;  %v14_v3 = vld [vmem:[%s64_s1 + $0x8] sm:$0xff] }
   0x3   :  { %v15_v4 = vsub.f32 %v11_v0, %v13_v2  ;;  %v16_v5 = vsub.f32 %v12_v1, %v14_v3 }
   0x5   :  { %v17_v6 = vmul.f32 %v15_v4, %v15_v4  ;;  %v18_v7 = vmul.f32 %v16_v5, %v16_v5 }
   0x7   :  { %v19_v8 = vmin.f32 %v17_v6, 0.25  ;;  %v20_v9 = vmin.f32 %v18_v7, 0.25 }
   0x9   :  { %v21_v10 = vadd.f32 %v20_v9, %v19_v8 }
   0xb   :  { %v22_v11 = vrot.slane %v21_v10, 4 }
   0xd   :  { %v23_v12 = vadd.f32 %v22_v11, %v21_v10 }
   0xf   :  { %v24_v13 = vrot.slane %v23_v12, 2 }
  0x11   :  { %v25_v14 = vadd.f32 %v24_v13, %v23_v12 }
  0x13   :  { %v26_v15 = vrot.slane %v25_v14, 1 }
  0x15   :  { %v27_v16 = vadd.f32 %v26_v15, %v25_v14 }
  0x17   :  { %28 = vst [vmem:[%s65_s2] sm:$0x1] %v27_v16 }

</bundles_post_ra>
